<compile_context>
chip_gen: v7x
topology: tpu7x:2x2x1
jax: 0.10.0
libtpu: 0.0.40
codegen_flags: <defaults>
</compile_context>

<pallas_src>
import functools

import jax
import jax.numpy as jnp
from jax.experimental import pallas as pl
from jax.experimental.pallas import tpu as pltpu


def _round_up(n, m):
    return (n + m - 1) // m * m


def _simplenet_kernel(x_ref, w1_ref, b1_ref, w2_ref, b2_ref, w3_ref, b3_ref,
                      o_ref, *, mm_dtype, precision):
    # Cast the x tile to the matmul operand dtype on-chip (no extra HBM pass).
    x = x_ref[...].astype(mm_dtype)
    # hidden1 + ReLU  (MXU, f32 accumulation; epilogue stays f32)
    h1 = jnp.dot(x, w1_ref[...], preferred_element_type=jnp.float32,
                 precision=precision)
    h1 = jnp.maximum(h1 + b1_ref[...], 0.0)
    # hidden2 + ReLU
    h2 = jnp.dot(h1.astype(mm_dtype), w2_ref[...],
                 preferred_element_type=jnp.float32, precision=precision)
    h2 = jnp.maximum(h2 + b2_ref[...], 0.0)
    # output + Sigmoid (sigmoid/exp runs on the EUP slot)
    out = jnp.dot(h2.astype(mm_dtype), w3_ref[...],
                  preferred_element_type=jnp.float32, precision=precision)
    out = jax.nn.sigmoid(out + b3_ref[...])
    o_ref[...] = out.astype(o_ref.dtype)


def prepare_params(params, *, use_bf16=True):
    """Cast/reshape parameters ONCE (hoisted out of the per-call forward path).

    params: (w1, b1, w2, b2, w3, b3) with w_i stored as (fan_in, fan_out)
            (transpose of torch.nn.Linear.weight) and b_i of shape (fan_out,)
            or (1, fan_out).  Biases stay f32 (epilogue is f32).
    """
    mm_dtype = jnp.bfloat16 if use_bf16 else jnp.float32
    w1, b1, w2, b2, w3, b3 = params
    _w = lambda w: jnp.asarray(w, mm_dtype)
    _b = lambda b: jnp.asarray(b, jnp.float32).reshape(1, -1)
    return (_w(w1), _b(b1), _w(w2), _b(b2), _w(w3), _b(b3))


def _choose_tile_b(B):
    # Small batches: a single full block (block dim == full array dim is always legal).
    if B <= 256:
        return B
    # Big tiles to amortize per-step overhead, but guarantee >= 2 grid steps so both
    # v7x TensorCores get a share of the batch.
    return min(1024, _round_up(pl.cdiv(B, 2), 128))


def simplenet_forward(x, prepared_params, *, tile_b=None, out_dtype=jnp.float32):
    """SimpleNet forward.  x: (B, in_features) float32, prepared_params from prepare_params."""
    w1, b1, w2, b2, w3, b3 = prepared_params
    B, d_in = x.shape
    h = w1.shape[1]
    d_out = w3.shape[1]
    assert w1.shape[0] == d_in and w2.shape == (h, h) and w3.shape[0] == h

    mm_dtype = w1.dtype
    precision = (jax.lax.Precision.HIGHEST
                 if mm_dtype == jnp.dtype(jnp.float32) else None)

    if tile_b is None:
        tile_b = _choose_tile_b(B)
    grid = (pl.cdiv(B, tile_b),)

    # Constant index_map -> same block every step -> weights stay VMEM-resident
    # (no re-DMA per batch tile).
    resident = lambda shape: pl.BlockSpec(shape, lambda i: (0, 0))

    kernel = functools.partial(_simplenet_kernel, mm_dtype=mm_dtype,
                               precision=precision)

    return pl.pallas_call(
        kernel,
        out_shape=jax.ShapeDtypeStruct((B, d_out), out_dtype),
        grid=grid,
        in_specs=[
            pl.BlockSpec((tile_b, d_in), lambda i: (i, 0)),   # batch-tiled input
            resident(w1.shape), resident(b1.shape),
            resident(w2.shape), resident(b2.shape),
            resident(w3.shape), resident(b3.shape),
        ],
        out_specs=pl.BlockSpec((tile_b, d_out), lambda i: (i, 0)),
        compiler_params=pltpu.CompilerParams(
            dimension_semantics=("parallel",),      # megacore-shard batch tiles (v7x)
            vmem_limit_bytes=32 * 1024 * 1024,      # explicit budget (v5e default is 16 MiB);
        ),                                          # per-tile footprint here is << 1 MiB
    )(x, w1, b1, w2, b2, w3, b3)


def init_params(key, in_channels, hidden_channels, out_channels, dtype=jnp.float32):
    # Deterministic synthetic init (PyTorch-style uniform bound 1/sqrt(fan_in)).
    ks = jax.random.split(key, 6)

    def lin(kw, kb, fan_in, fan_out):
        bound = 1.0 / jnp.sqrt(fan_in)
        # stored as (fan_in, fan_out) == W.T relative to PyTorch's (out, in)
        w = jax.random.uniform(kw, (fan_in, fan_out), dtype, -bound, bound)
        b = jax.random.uniform(kb, (1, fan_out), dtype, -bound, bound)
        return w, b

    w1, b1 = lin(ks[0], ks[1], in_channels, hidden_channels)
    w2, b2 = lin(ks[2], ks[3], hidden_channels, hidden_channels)
    w3, b3 = lin(ks[4], ks[5], hidden_channels, out_channels)
    return (w1, b1, w2, b2, w3, b3)


def reference_forward(x, params):
    w1, b1, w2, b2, w3, b3 = params
    h = jnp.maximum(x @ w1 + b1, 0.0)
    h = jnp.maximum(h @ w2 + b2, 0.0)
    return jax.nn.sigmoid(h @ w3 + b3)


if __name__ == "__main__":
    key = jax.random.PRNGKey(0)
    k_x, k_p, k_x2 = jax.random.split(key, 3)

    batch = 8
    in_channels, hidden_channels, out_channels = 16, 32, 8

    x = jax.random.normal(k_x, (batch, in_channels), jnp.float32)
    raw_params = init_params(k_p, in_channels, hidden_channels, out_channels)
    ref = reference_forward(x, raw_params)

    # Default path: bf16 matmul operands (f32 accumulate / f32 epilogue).
    params_bf16 = prepare_params(raw_params, use_bf16=True)
    out = jax.block_until_ready(simplenet_forward(x, params_bf16))
    assert out.shape == (batch, out_channels)
    assert jnp.allclose(out, ref, atol=2e-2, rtol=2e-2)

    # True-f32 path (precision=HIGHEST) for tight accuracy.
    params_f32 = prepare_params(raw_params, use_bf16=False)
    out_f32 = jax.block_until_ready(simplenet_forward(x, params_f32))
    assert jnp.allclose(out_f32, ref, atol=1e-5, rtol=1e-5)

    # Ragged multi-tile batch: B=300 -> tile_b=256, grid=2 (last block masked by Pallas).
    x2 = jax.random.normal(k_x2, (300, in_channels), jnp.float32)
    out2 = jax.block_until_ready(simplenet_forward(x2, params_bf16))
    ref2 = reference_forward(x2, raw_params)
    assert out2.shape == (300, out_channels)
    assert jnp.allclose(out2, ref2, atol=2e-2, rtol=2e-2)

    print("KERNEL_OK")
</pallas_src>

<mosaic_0001>
module attributes {stable_mosaic.version = 11 : i64} {
  func.func @_simplenet_kernel(%arg0: i32, %arg1: memref<8x16xf32, #tpu.memory_space<vmem>>, %arg2: memref<16x32xbf16, #tpu.memory_space<vmem>>, %arg3: memref<1x32xf32, #tpu.memory_space<vmem>>, %arg4: memref<32x32xbf16, #tpu.memory_space<vmem>>, %arg5: memref<1x32xf32, #tpu.memory_space<vmem>>, %arg6: memref<32x8xbf16, #tpu.memory_space<vmem>>, %arg7: memref<1x8xf32, #tpu.memory_space<vmem>>, %arg8: memref<8x8xf32, #tpu.memory_space<vmem>>) attributes {dimension_semantics = [#tpu.dimension_semantics<parallel>], iteration_bounds = array<i64: 1>, scalar_prefetch = 0 : i64, scratch_operands = 0 : i64, tpu.core_type = #tpu.core_type<tc>, window_params = [{transform_indices = @transform_0, window_bounds = array<i64: 8, 16>}, {pipeline_mode = #tpu.pipeline_mode<synchronous>, transform_indices = @transform_1, window_bounds = array<i64: 16, 32>}, {pipeline_mode = #tpu.pipeline_mode<synchronous>, transform_indices = @transform_2, window_bounds = array<i64: 1, 32>}, {pipeline_mode = #tpu.pipeline_mode<synchronous>, transform_indices = @transform_3, window_bounds = array<i64: 32, 32>}, {pipeline_mode = #tpu.pipeline_mode<synchronous>, transform_indices = @transform_4, window_bounds = array<i64: 1, 32>}, {pipeline_mode = #tpu.pipeline_mode<synchronous>, transform_indices = @transform_5, window_bounds = array<i64: 32, 8>}, {pipeline_mode = #tpu.pipeline_mode<synchronous>, transform_indices = @transform_6, window_bounds = array<i64: 1, 8>}, {transform_indices = @transform_7, window_bounds = array<i64: 8, 8>}]} {
    %c0 = arith.constant 0 : index
    %c0_0 = arith.constant 0 : index
    %0 = vector.load %arg1[%c0, %c0_0] : memref<8x16xf32, #tpu.memory_space<vmem>>, vector<8x16xf32>
    %1 = arith.truncf %0 : vector<8x16xf32> to vector<8x16xbf16>
    %c0_1 = arith.constant 0 : index
    %c0_2 = arith.constant 0 : index
    %2 = vector.load %arg2[%c0_1, %c0_2] : memref<16x32xbf16, #tpu.memory_space<vmem>>, vector<16x32xbf16>
    %cst = arith.constant dense<0.000000e+00> : vector<8x32xf32>
    %3 = tpu.matmul %1, %2, %cst {dimension_numbers = #tpu.dot_dimension_numbers<[1], [0], [0], [1], [0, 0, 1, 1], [], []>} : vector<8x16xbf16>, vector<16x32xbf16>, vector<8x32xf32> -> vector<8x32xf32>
    %c0_3 = arith.constant 0 : index
    %c0_4 = arith.constant 0 : index
    %4 = vector.load %arg3[%c0_3, %c0_4] : memref<1x32xf32, #tpu.memory_space<vmem>>, vector<1x32xf32>
    %5 = vector.broadcast %4 : vector<1x32xf32> to vector<8x32xf32>
    %6 = arith.addf %3, %5 : vector<8x32xf32>
    %cst_5 = arith.constant 0.000000e+00 : f32
    %7 = vector.broadcast %cst_5 : f32 to vector<8x32xf32>
    %8 = arith.maximumf %6, %7 : vector<8x32xf32>
    %9 = arith.truncf %8 : vector<8x32xf32> to vector<8x32xbf16>
    %c0_6 = arith.constant 0 : index
    %c0_7 = arith.constant 0 : index
    %10 = vector.load %arg4[%c0_6, %c0_7] : memref<32x32xbf16, #tpu.memory_space<vmem>>, vector<32x32xbf16>
    %cst_8 = arith.constant dense<0.000000e+00> : vector<8x32xf32>
    %11 = tpu.matmul %9, %10, %cst_8 {dimension_numbers = #tpu.dot_dimension_numbers<[1], [0], [0], [1], [0, 0, 1, 1], [], []>} : vector<8x32xbf16>, vector<32x32xbf16>, vector<8x32xf32> -> vector<8x32xf32>
    %c0_9 = arith.constant 0 : index
    %c0_10 = arith.constant 0 : index
    %12 = vector.load %arg5[%c0_9, %c0_10] : memref<1x32xf32, #tpu.memory_space<vmem>>, vector<1x32xf32>
    %13 = vector.broadcast %12 : vector<1x32xf32> to vector<8x32xf32>
    %14 = arith.addf %11, %13 : vector<8x32xf32>
    %cst_11 = arith.constant 0.000000e+00 : f32
    %15 = vector.broadcast %cst_11 : f32 to vector<8x32xf32>
    %16 = arith.maximumf %14, %15 : vector<8x32xf32>
    %17 = arith.truncf %16 : vector<8x32xf32> to vector<8x32xbf16>
    %c0_12 = arith.constant 0 : index
    %c0_13 = arith.constant 0 : index
    %18 = vector.load %arg6[%c0_12, %c0_13] : memref<32x8xbf16, #tpu.memory_space<vmem>>, vector<32x8xbf16>
    %cst_14 = arith.constant dense<0.000000e+00> : vector<8x8xf32>
    %19 = tpu.matmul %17, %18, %cst_14 {dimension_numbers = #tpu.dot_dimension_numbers<[1], [0], [0], [1], [0, 0, 1, 1], [], []>} : vector<8x32xbf16>, vector<32x8xbf16>, vector<8x8xf32> -> vector<8x8xf32>
    %c0_15 = arith.constant 0 : index
    %c0_16 = arith.constant 0 : index
    %20 = vector.load %arg7[%c0_15, %c0_16] : memref<1x8xf32, #tpu.memory_space<vmem>>, vector<1x8xf32>
    %21 = vector.broadcast %20 : vector<1x8xf32> to vector<8x8xf32>
    %22 = arith.addf %19, %21 : vector<8x8xf32>
    %23 = arith.negf %22 : vector<8x8xf32>
    %24 = math.exp %23 : vector<8x8xf32>
    %cst_17 = arith.constant 1.000000e+00 : f32
    %25 = vector.broadcast %cst_17 : f32 to vector<8x8xf32>
    %26 = arith.addf %25, %24 : vector<8x8xf32>
    %27 = arith.divf %25, %26 : vector<8x8xf32>
    %c0_18 = arith.constant 0 : index
    %c0_19 = arith.constant 0 : index
    %28 = vector.load %arg8[%c0_18, %c0_19] : memref<8x8xf32, #tpu.memory_space<vmem>>, vector<8x8xf32>
    tpu.vector_store %arg8[%c0_18, %c0_19], %27 {strides = array<i32>} : memref<8x8xf32, #tpu.memory_space<vmem>>, vector<8x8xf32>,
    return
  }
  func.func @transform_0(%arg0: i32) -> (i32, i32) {
    %c0_i32 = arith.constant 0 : i32
    %c0_i32_0 = arith.constant 0 : i32
    return %arg0, %c0_i32 : i32, i32
  }
  func.func @transform_1(%arg0: i32) -> (i32, i32) {
    %c0_i32 = arith.constant 0 : i32
    %c0_i32_0 = arith.constant 0 : i32
    %c0_i32_1 = arith.constant 0 : i32
    return %c0_i32, %c0_i32_0 : i32, i32
  }
  func.func @transform_2(%arg0: i32) -> (i32, i32) {
    %c0_i32 = arith.constant 0 : i32
    %c0_i32_0 = arith.constant 0 : i32
    %c0_i32_1 = arith.constant 0 : i32
    return %c0_i32, %c0_i32_0 : i32, i32
  }
  func.func @transform_3(%arg0: i32) -> (i32, i32) {
    %c0_i32 = arith.constant 0 : i32
    %c0_i32_0 = arith.constant 0 : i32
    %c0_i32_1 = arith.constant 0 : i32
    return %c0_i32, %c0_i32_0 : i32, i32
  }
  func.func @transform_4(%arg0: i32) -> (i32, i32) {
    %c0_i32 = arith.constant 0 : i32
    %c0_i32_0 = arith.constant 0 : i32
    %c0_i32_1 = arith.constant 0 : i32
    return %c0_i32, %c0_i32_0 : i32, i32
  }
  func.func @transform_5(%arg0: i32) -> (i32, i32) {
    %c0_i32 = arith.constant 0 : i32
    %c0_i32_0 = arith.constant 0 : i32
    %c0_i32_1 = arith.constant 0 : i32
    return %c0_i32, %c0_i32_0 : i32, i32
  }
  func.func @transform_6(%arg0: i32) -> (i32, i32) {
    %c0_i32 = arith.constant 0 : i32
    %c0_i32_0 = arith.constant 0 : i32
    %c0_i32_1 = arith.constant 0 : i32
    return %c0_i32, %c0_i32_0 : i32, i32
  }
  func.func @transform_7(%arg0: i32) -> (i32, i32) {
    %c0_i32 = arith.constant 0 : i32
    %c0_i32_0 = arith.constant 0 : i32
    return %arg0, %c0_i32 : i32, i32
  }
}

</mosaic_0001>

<bundles_post_ra>
// kernel: tpu_custom_call.1
= control target key start
LH: loop header
LB: loop body
LE: loop exit
PB: predicated region body
PF: predicated region fallthrough
CT: control target
= control target key end

     0   :  { %12 = vsyncpa [#allocation3], 0  ;;  %s462_s0 = inlined_call_operand.vmem [shape: f32[8,16], index: 0, kind: input, shape index: {}]   ;;  %s463_s1 = inlined_call_operand.hbm [shape: bf16[16,32], index: 1, kind: input, shape index: {}]   ;;  %s464_s2 = inlined_call_operand.vmem [shape: f32[1,32], index: 2, kind: input, shape index: {}]   ;;  %s465_s3 = inlined_call_operand.vmem [shape: bf16[32,32], index: 3, kind: input, shape index: {}]   ;;  %s466_s4 = inlined_call_operand.vmem [shape: f32[1,32], index: 4, kind: input, shape index: {}]   ;;  %s467_s5 = inlined_call_operand.vmem [shape: bf16[32,8], index: 5, kind: input, shape index: {}]   ;;  %s468_s6 = inlined_call_operand.vmem [shape: f32[1,8], index: 6, kind: input, shape index: {}]   ;;  %s469_s7 = inlined_call_operand.hbm [shape: f32[8,8], index: 7, kind: output, shape index: {}]  }
   0x1   :  { %13 = vsyncpa [#allocation4], 0  ;;  %s368_s24 = smov [#allocation2]   ;;  %s320_s28 = scalar_lea.hbm %s463_s1, 128 }
   0x2   :  { %s21_s25 = sshll.u32 %s368_s24, 4  ;;  %p321_p0 = scmp.ne.s32.totalorder %s463_s1, %s320_s28  ;;  %s22_s25 = int_to_ptr.vmem [resolvable:$true] %s21_s25 }
   0x3   :  { %p324_p1 = scmp.lt.u32.totalorder %s320_s28, %s463_s1 }
   0x5   :  { %p326_p2 = pnand %p324_p1, %p321_p0 }
   0x7   :  { %329 = shalt.err (!%p326_p2)
}
   0x8   :  { %s330_s10 = scalar_lea.vmem %s22_s25, 128  ;;  %p335_p4 = scmp.lt.s32.totalorder %s22_s25, %s22_s25 }
   0x9   :  { %p331_p3 = scmp.ne.s32.totalorder %s22_s25, %s330_s10  ;;  %p336_p5 = scmp.lt.s32.totalorder %s330_s10, %s330_s10 }
   0xb   :  { %p337_p6 = por %p336_p5, %p335_p4 }
   0xd   :  { %p338_p7 = pnand %p337_p6, %p331_p3 }
   0xf   :  { %341 = shalt.err (!%p338_p7)
}
  0x10   :  { %s369_s11 = smov 64   ;;  %s370_s12 = smov 4  }
  0x11   :  { %27 = dma.hbm_to_vmem [thread:$0]  %s463_s1, 128, %s22_s25, [#allocation3], %s369_s11, %s369_s11, %s370_s12  }
  0x12   :  { %364 = dma.done.wait [#allocation3], 128  }
  0x13   :  { %365 = vsyncadd [#allocation3], 4294967168  ;;  %v371_v0 = vmov 0.0   ;;  %vm372_vm0 = vmmov 0   ;;  %v311_v1 = vld [vmem:[#allocation2] sm:$0xff]   ;;  %vm59_vm1 = vcmask 130048  }
  0x14   :  { %283 = vmatprep.subr.bf16.mxu0 %v371_v0  ;;  %285 = vmatprep.mubr.msk.bf16.mxu0 %vm372_vm0, %v371_v0  ;;  %v42_v2 = vld [vmem:[%s462_s0] sm:$0xff]  ;;  %v313_v5 = vld [vmem:[%s465_s3 + $0x8] sm:$0xff]   ;;  %vm128_vm2 = vcmask 261120   ;;  %vm246_vm3 = vcmask 64512  }
  0x15   :  { %289 = vmatprep.subr.bf16.mxu1 %v371_v0  ;;  %293 = vmatprep.mubr.msk.bf16.mxu1 %vm372_vm0, %v371_v0  ;;  %v43_v3 = vpack.c.bf16 %v42_v2, %v42_v2  ;;  %v312_v4 = vld [vmem:[%s465_s3] sm:$0xff]   ;;  %v315_v15 = vld [vmem:[%s467_s5 + $0x8] sm:$0xff]  }
  0x16   :  { %284 = vmatpush3.bf16.msra.mxu0 %v311_v1  ;;  %290 = vmatpush3.bf16.msra.mxu1 %v312_v4  ;;  %v314_v6 = vld [vmem:[%s467_s5] sm:$0xff]  }
  0x17   :  { %297 = vmatprep.subr.bf16.mxu0 %v371_v0  ;;  %291 = vmatprep.subr.bf16.mxu1 %v371_v0  ;;  %v263_v7 = vld [vmem:[%s464_s2] ss:$0 sm:$0xff] }
  0x18   :  { %v266_v16 = vld [vmem:[%s466_s4] ss:$0 sm:$0xff]  ;;  %s373_s4 = smov [#allocation5]  }
  0x19   :  { %286 = vmatmul.mubr.msk.bf16.vlgmr.msra.gmra.mrb[0].mxu0 %vm59_vm1, %v43_v3  ;;  %v270_v24 = vld [vmem:[%s468_s6] ss:$0 sm:$0xff]  ;;  %s254_s5 = sshll.u32 %s373_s4, 4  ;;  %s255_s5 = int_to_ptr.vmem [resolvable:$true] %s254_s5 }
  0x1a   :  { %301 = vmatprep.mubr.msk.bf16.mxu0 %vm372_vm0, %v371_v0  ;;  %292 = vmatpush3.bf16.msra.mxu1 %v313_v5  ;;  %s342_s27 = scalar_lea.vmem %s255_s5, 128  ;;  %p347_p9 = scmp.lt.s32.totalorder %s255_s5, %s255_s5 }
  0x1b   :  { %298 = vmatpush3.bf16.msra.mxu0 %v314_v6  ;;  %p343_p8 = scmp.ne.s32.totalorder %s255_s5, %s342_s27  ;;  %p348_p10 = scmp.lt.s32.totalorder %s342_s27, %s342_s27 }
  0x1c   :  { %299 = vmatprep.subr.bf16.mxu0 %v371_v0 }
  0x1d   :  { %p349_p11 = por %p348_p10, %p347_p9 }
  0x1f   :  { %300 = vmatpush3.bf16.msra.mxu0 %v315_v15  ;;  %p350_p12 = pnand %p349_p11, %p343_p8 }
  0xec   :  { %v97_v8 = vpop.f32.mrb[0].mxu0 }
  0xed   :  { %v98_v9 = vadd.f32 %v263_v7, %v97_v8  ;;  %v287_v10 = vpop.f32.mrb[1].mxu0 }
  0xee   :  { %v100_v11 = vpop.f32.mrb[2].mxu0 }
  0xef   :  { %v103_v12 = vmax.f32 %v98_v9, 0.0  ;;  %v288_v13 = vpop.f32.mrb[3].mxu0 }
  0xf1   :  { %v104_v14 = vpack.c.bf16 %v103_v12, %v103_v12 }
  0xf3   :  { %294 = vmatmul.mubr.msk.bf16.vlgmr.msra.gmra.mrb[0].mxu1 %vm128_vm2, %v104_v14 }
 0x1c6   :  { %v166_v17 = vpop.f32.mrb[0].mxu1 }
 0x1c7   :  { %v167_v18 = vadd.f32 %v266_v16, %v166_v17  ;;  %v295_v19 = vpop.f32.mrb[1].mxu1 }
 0x1c8   :  { %v169_v20 = vpop.f32.mrb[2].mxu1 }
 0x1c9   :  { %v172_v21 = vmax.f32 %v167_v18, 0.0  ;;  %v296_v22 = vpop.f32.mrb[3].mxu1 }
 0x1cb   :  { %v173_v23 = vpack.c.bf16 %v172_v21, %v172_v21 }
 0x1cd   :  { %302 = vmatmul.mubr.msk.bf16.vlgmr.msra.gmra.mrb[4].mxu0 %vm128_vm2, %v173_v23 }
 0x2a0   :  { %v234_v25 = vpop.f32.mrb[4].mxu0 }
 0x2a1   :  { %v235_v26 = vadd.f32 %v270_v24, %v234_v25  ;;  %v303_v27 = vpop.f32.mrb[5].mxu0 }
 0x2a2   :  { %v237_v28 = vpop.f32.mrb[6].mxu0 }
 0x2a3   :  { %v274_v29 = vmul.f32 -1.442695, %v235_v26  ;;  %v304_v30 = vpop.f32.mrb[7].mxu0 }
 0x2a5   :  { %316 = vpow2.f32 %v274_v29 }
 0x2af   :  { %v317_v31 = vpop.eup %316 }
 0x2b0   :  { %v243_v32 = vadd.f32 1.0, %v317_v31 }
 0x2b2   :  { %318 = vrcp.f32 %v243_v32 }
 0x2bc   :  { %v319_v33 = vpop.eup %318 }
 0x2bd   :  { %247 = vst.msk [vmem:[#allocation5] sm:$0xff] %vm246_vm3, %v319_v33 }
 0x2be   :  { %353 = shalt.err (!%p350_p12)
}
 0x2bf   :  { %s354_s29 = scalar_lea.hbm %s469_s7, 128 }
 0x2c0   :  { %p355_p13 = scmp.ne.s32.totalorder %s469_s7, %s354_s29  ;;  %p358_p0 = scmp.lt.u32.totalorder %s354_s29, %s469_s7 }
 0x2c2   :  { %p360_p1 = pnand %p358_p0, %p355_p13 }
 0x2c4   :  { %363 = shalt.err (!%p360_p1)
}
 0x2c5   :  { %257 = dma.vmem_to_hbm [thread:$0]  %s255_s5, 128, %s469_s7, [#allocation4]  }
 0x2c6   :  { %366 = dma.done.wait [#allocation4], 128  }
 0x2c7   :  { %367 = vsyncadd [#allocation4], 4294967168 }
 0x2c8   :  { %261 = vsyncpa [#allocation3], 1 }
 0x2c9   :  { %262 = vsyncpa [#allocation4], 1 }

</bundles_post_ra>
